<compile_context>
chip_gen: v6e
topology: v6e:2x2x1
jax: 0.10.0
libtpu: 0.0.40
codegen_flags: <defaults>
</compile_context>

<pallas_src>
import jax
import jax.numpy as jnp
from jax import lax
from jax.experimental import pallas as pl
from jax.experimental.pallas import tpu as pltpu

BN_EPS = 1e-5


def _build_rep_layers(in_channels, out_channels, repeats,
                      grow_first=True, start_with_act=True):
    """Mirror XceptionBlock.__init__: list of (act_before, cin, cout)."""
    layers = []
    filters = in_channels
    if grow_first:
        layers.append([True, in_channels, out_channels])
        filters = out_channels
    for _ in range(repeats)[1:]:
        layers.append([True, filters, out_channels])
        filters = out_channels
    if not grow_first:
        layers.append([True, filters, out_channels])
    if not start_with_act and layers:
        layers[0][0] = False
    return [tuple(l) for l in layers]


def _make_kernel(layer_cfg, K, P, L, NL, NLp, has_skip):
    """layer_cfg: tuple of (act_before, cin).  Everything unrolled at trace time."""
    inv_nl = 1.0 / NL
    n_pad = NLp - NL

    def _bn(h):
        # BatchNorm1d training-mode forward (gamma=1, beta=0, biased variance),
        # two-pass statistics (robust vs. E[x^2]-mean^2 cancellation).
        # Pre-BN `h` has zero pad lanes; the centered pass would see `-mean`
        # there, so subtract that contribution exactly.
        mean = jnp.sum(h, axis=1, keepdims=True) * inv_nl
        d = h - mean
        ssd = jnp.sum(d * d, axis=1, keepdims=True)
        if n_pad:
            ssd = ssd - n_pad * mean * mean
        var = jnp.maximum(ssd * inv_nl, 0.0)
        return d * lax.rsqrt(var + BN_EPS)

    def kernel(*refs):
        x_ref = refs[0]
        out_ref = refs[-1]
        w_refs = refs[1:-1]

        x_in = x_ref[...].astype(jnp.float32)              # (Cin, NLp), pad lanes = 0

        # ---- layer-invariant masks, built ONCE (hoisted) ----------------------
        lane = lax.broadcasted_iota(jnp.int32, (1, NLp), 1)
        pos = lane % L                                      # within-sample position
        tap_ok = []
        for j in range(K):
            off = j - P
            ok = jnp.logical_and(pos + off >= 0, pos + off < L)
            if n_pad:
                ok = jnp.logical_and(ok, lane < NL)         # kill pad lanes on every tap
            tap_ok.append(ok)
        # One full-height (K*C, NLp) 0/1 mask per distinct channel count:
        # broadcast once here, not once per layer (JAX does not CSE broadcasts).
        mask_by_c = {}
        for c in sorted({cin for _, cin in layer_cfg}):
            mask_by_c[c] = jnp.concatenate(
                [jnp.broadcast_to(m, (c, NLp)) for m in tap_ok],
                axis=0).astype(jnp.float32)

        # ---- skip branch FIRST so x_in's live range ends at layer 0 -----------
        if has_skip:
            skip_ref = w_refs[len(layer_cfg)]               # (Cout, Cin) bf16
            s = jnp.dot(skip_ref[...], x_in.astype(jnp.bfloat16),
                        preferred_element_type=jnp.float32)
            s = _bn(s)
        else:
            s = x_in

        # ---- the `rep` stack ---------------------------------------------------
        h = x_in
        for li, (act_before, cin) in enumerate(layer_cfg):
            wf_ref = w_refs[li]                             # (Cout, K*Cin) bf16 fused
            if act_before:
                h = jnp.maximum(h, 0.0)                     # ReLU (f32, VPU)
            # K shifted views of h stacked along the sublane axis -> ONE matmul.
            slabs = []
            for j in range(K):
                off = j - P
                slabs.append(h if off == 0
                             else pltpu.roll(h, shift=(-off) % NLp, axis=1))
            stacked = jnp.concatenate(slabs, axis=0) * mask_by_c[cin]
            h = jnp.dot(wf_ref[...], stacked.astype(jnp.bfloat16),
                        preferred_element_type=jnp.float32)
            h = _bn(h)                                      # BatchNorm1d

        out_ref[...] = (h + s).astype(out_ref.dtype)

    return kernel


def xception_block_forward(x, params, *, kernel_size, has_skip):
    """x: (N, Cin, L) float32 -> (N, Cout, L) float32.

    Call this under jax.jit so the NCW->(C,NL) relayout / pad / output slice
    fuse with the pallas_call instead of being standalone HBM round-trips.
    """
    N, Cin, L = x.shape
    K = kernel_size
    P = (K - 1) // 2
    Cout = params["layers"][-1]["pw"].shape[0]
    NL = N * L
    NLp = ((NL + 127) // 128) * 128                         # lane-dense padding

    # (N, C, L) -> (C, N*L), zero-pad the lane axis to a multiple of 128.
    x2 = jnp.transpose(x, (1, 0, 2)).reshape(Cin, NL)
    if NLp != NL:
        x2 = jnp.pad(x2, ((0, 0), (0, NLp - NL)))

    args = [x2]
    layer_cfg = []
    flops = 0
    for layer in params["layers"]:
        dw = layer["dw"]                                    # (cin, K)
        pw = layer["pw"]                                    # (cout, cin)
        cout, cin = pw.shape
        layer_cfg.append((bool(layer["act_before"]), cin))
        # Fuse depthwise taps into the pointwise weights and flatten the taps
        # onto the contraction axis: wf2[o, j*cin + c] = pw[o, c] * dw[c, j].
        wf = pw[None, :, :] * jnp.transpose(dw)[:, None, :]        # (K, cout, cin)
        wf2 = jnp.transpose(wf, (1, 0, 2)).reshape(cout, K * cin)  # (cout, K*cin)
        args.append(wf2.astype(jnp.bfloat16))               # bf16 MXU operand
        flops += 2 * cout * (K * cin) * NLp + 10 * cout * NLp
    if has_skip:
        sw = params["skip_w"]                               # (Cout, Cin)
        args.append(sw.astype(jnp.bfloat16))
        co, ci = sw.shape
        flops += 2 * co * ci * NLp + 10 * co * NLp

    kernel = _make_kernel(tuple(layer_cfg), K, P, L, NL, NLp, has_skip)

    in_bytes = sum(int(a.size) * int(a.dtype.itemsize) for a in args)
    out_bytes = Cout * NLp * 4
    n_bn = len(layer_cfg) + int(has_skip)

    # Generation-aware VMEM cap: leave headroom under the physical capacity
    # (v7x: 64 MiB -> ~48 MiB usable; v5e/v6e: 128 MiB -> ~112 MiB usable).
    try:
        cap = int(pltpu.get_tpu_info().vmem_capacity_bytes)
    except Exception:
        cap = 64 << 20                                      # conservative fallback
    cap = max(cap - (16 << 20), cap // 2)
    need = in_bytes + out_bytes + (2 * K + 4) * max(Cin, Cout) * NLp * 4
    vmem_limit = int(min(max(2 * need, 4 << 20), cap))

    # Full-array VMEM specs + no grid: single step, single-buffered operands
    # (nothing to pipeline, so no double-buffer VMEM cost).
    vmem_spec = pl.BlockSpec(memory_space=pltpu.MemorySpace.VMEM)

    out2 = pl.pallas_call(
        kernel,
        out_shape=jax.ShapeDtypeStruct((Cout, NLp), jnp.float32),
        in_specs=[vmem_spec] * len(args),
        out_specs=vmem_spec,
        compiler_params=pltpu.CompilerParams(vmem_limit_bytes=vmem_limit),
        cost_estimate=pl.CostEstimate(
            flops=flops, transcendentals=n_bn * Cout,
            bytes_accessed=in_bytes + out_bytes),
    )(*args)

    # (Cout, NLp) -> drop pad -> (N, Cout, L)
    out2 = out2[:, :NL]
    return jnp.transpose(out2.reshape(Cout, N, L), (1, 0, 2))


# ----------------------- deterministic parameter init -----------------------
def init_params(key, in_channels, out_channels, repeats, kernel_size,
                grow_first=True, start_with_act=True):
    layer_defs = _build_rep_layers(in_channels, out_channels, repeats,
                                   grow_first, start_with_act)
    params = {"layers": []}
    for act_before, cin, cout in layer_defs:
        key, k_dw, k_pw = jax.random.split(key, 3)
        dw = 0.05 * jax.random.normal(k_dw, (cin, kernel_size), jnp.float32)
        pw = 0.05 * jax.random.normal(k_pw, (cout, cin), jnp.float32)
        params["layers"].append({"act_before": act_before, "dw": dw, "pw": pw})
    has_skip = (out_channels != in_channels)   # stride is fixed to 1 here
    if has_skip:
        key, k_sk = jax.random.split(key)
        params["skip_w"] = 0.05 * jax.random.normal(
            k_sk, (out_channels, in_channels), jnp.float32)
    return params, has_skip


# ---------------------------- pure-JAX reference ----------------------------
def ref_forward(x, params, kernel_size, has_skip):
    P = (kernel_size - 1) // 2

    def bn(h):
        mean = jnp.mean(h, axis=(0, 2), keepdims=True)
        var = jnp.mean(jnp.square(h - mean), axis=(0, 2), keepdims=True)
        return (h - mean) / jnp.sqrt(var + BN_EPS)

    h = x
    for layer in params["layers"]:
        if layer["act_before"]:
            h = jnp.maximum(h, 0.0)
        C = h.shape[1]
        h = lax.conv_general_dilated(
            h, layer["dw"][:, None, :], window_strides=(1,),
            padding=[(P, P)], feature_group_count=C,
            dimension_numbers=("NCH", "OIH", "NCH"))
        h = jnp.einsum("oc,ncl->nol", layer["pw"], h)
        h = bn(h)
    if has_skip:
        s = jnp.einsum("oc,ncl->nol", params["skip_w"], x)
        s = bn(s)
    else:
        s = x
    return h + s


if __name__ == "__main__":
    # XceptionBlock(in_channels=8, out_channels=16, repeats=2, kernel_size=3,
    #               stride=1, act='relu', start_with_act=True, grow_first=True)
    # L=60 -> N*L=120 is padded to 128 inside the wrapper (exercises padding).
    N, C_IN, C_OUT, L, K, REPEATS = 2, 8, 16, 60, 3, 2

    key = jax.random.PRNGKey(0)
    key, kx = jax.random.split(key)
    x = jax.random.normal(kx, (N, C_IN, L), jnp.float32)
    params, has_skip = init_params(key, C_IN, C_OUT, REPEATS, K)

    # Single jit around relayout + pallas_call + output relayout (params are
    # closed over, so act_before flags stay Python bools at trace time).
    fwd = jax.jit(lambda xx: xception_block_forward(
        xx, params, kernel_size=K, has_skip=has_skip))

    out = jax.block_until_ready(fwd(x))
    assert out.shape == (N, C_OUT, L)

    ref = ref_forward(x, params, K, has_skip)
    # bf16 MXU operands (f32 accumulate) vs the f32 reference: ~1e-2 scale error.
    if not bool(jnp.allclose(out, ref, atol=5e-2, rtol=5e-2)):
        max_err = float(jnp.max(jnp.abs(out - ref)))
        raise AssertionError(f"mismatch vs reference, max abs err = {max_err}")

    print("KERNEL_OK")
</pallas_src>

<mosaic_0001>
module attributes {stable_mosaic.version = 11 : i64} {
  func.func @kernel(%arg0: memref<8x128xf32, #tpu.memory_space<vmem>>, %arg1: memref<16x24xbf16, #tpu.memory_space<vmem>>, %arg2: memref<16x48xbf16, #tpu.memory_space<vmem>>, %arg3: memref<16x8xbf16, #tpu.memory_space<vmem>>, %arg4: memref<16x128xf32, #tpu.memory_space<vmem>>) attributes {dimension_semantics = [], scalar_prefetch = 0 : i64, scratch_operands = 0 : i64, tpu.core_type = #tpu.core_type<tc>} {
    %c0 = arith.constant 0 : index
    %c0_0 = arith.constant 0 : index
    %0 = vector.load %arg0[%c0, %c0_0] : memref<8x128xf32, #tpu.memory_space<vmem>>, vector<8x128xf32>
    %1 = tpu.iota {dimensions = array<i32: 1>} : vector<1x128xi32>
    %c60_i32 = arith.constant 60 : i32
    %c0_i32 = arith.constant 0 : i32
    %2 = arith.cmpi eq, %c60_i32, %c0_i32 : i32
    %c1_i32 = arith.constant 1 : i32
    %3 = arith.select %2, %c1_i32, %c60_i32 : i32
    %4 = vector.broadcast %3 : i32 to vector<1x128xi32>
    %5 = arith.remsi %1, %4 : vector<1x128xi32>
    %c0_i32_1 = arith.constant 0 : i32
    %6 = vector.broadcast %c0_i32_1 : i32 to vector<1x128xi32>
    %7 = arith.cmpi ne, %5, %6 : vector<1x128xi32>
    %c0_i32_2 = arith.constant 0 : i32
    %8 = vector.broadcast %c0_i32_2 : i32 to vector<1x128xi32>
    %9 = arith.cmpi slt, %5, %8 : vector<1x128xi32>
    %c0_i32_3 = arith.constant 0 : i32
    %10 = arith.cmpi slt, %3, %c0_i32_3 : i32
    %11 = vector.broadcast %10 : i1 to vector<1x128xi1>
    %12 = vector.broadcast %11 : vector<1x128xi1> to vector<1x128xi1>
    %13 = arith.xori %9, %12 : vector<1x128xi1>
    %14 = arith.andi %13, %7 : vector<1x128xi1>
    %15 = vector.broadcast %3 : i32 to vector<1x128xi32>
    %16 = arith.addi %5, %15 : vector<1x128xi32>
    %17 = arith.select %14, %16, %5 : vector<1x128xi1>, vector<1x128xi32>
    %c-1_i32 = arith.constant -1 : i32
    %18 = vector.broadcast %c-1_i32 : i32 to vector<1x128xi32>
    %19 = arith.addi %17, %18 : vector<1x128xi32>
    %c0_i32_4 = arith.constant 0 : i32
    %20 = vector.broadcast %c0_i32_4 : i32 to vector<1x128xi32>
    %21 = arith.cmpi sge, %19, %20 : vector<1x128xi32>
    %c-1_i32_5 = arith.constant -1 : i32
    %22 = vector.broadcast %c-1_i32_5 : i32 to vector<1x128xi32>
    %23 = arith.addi %17, %22 : vector<1x128xi32>
    %c60_i32_6 = arith.constant 60 : i32
    %24 = vector.broadcast %c60_i32_6 : i32 to vector<1x128xi32>
    %25 = arith.cmpi slt, %23, %24 : vector<1x128xi32>
    %26 = arith.andi %21, %25 : vector<1x128xi1>
    %c120_i32 = arith.constant 120 : i32
    %27 = vector.broadcast %c120_i32 : i32 to vector<1x128xi32>
    %28 = arith.cmpi slt, %1, %27 : vector<1x128xi32>
    %29 = arith.andi %26, %28 : vector<1x128xi1>
    %c0_i32_7 = arith.constant 0 : i32
    %30 = vector.broadcast %c0_i32_7 : i32 to vector<1x128xi32>
    %31 = arith.addi %17, %30 : vector<1x128xi32>
    %c0_i32_8 = arith.constant 0 : i32
    %32 = vector.broadcast %c0_i32_8 : i32 to vector<1x128xi32>
    %33 = arith.cmpi sge, %31, %32 : vector<1x128xi32>
    %c0_i32_9 = arith.constant 0 : i32
    %34 = vector.broadcast %c0_i32_9 : i32 to vector<1x128xi32>
    %35 = arith.addi %17, %34 : vector<1x128xi32>
    %c60_i32_10 = arith.constant 60 : i32
    %36 = vector.broadcast %c60_i32_10 : i32 to vector<1x128xi32>
    %37 = arith.cmpi slt, %35, %36 : vector<1x128xi32>
    %38 = arith.andi %33, %37 : vector<1x128xi1>
    %c120_i32_11 = arith.constant 120 : i32
    %39 = vector.broadcast %c120_i32_11 : i32 to vector<1x128xi32>
    %40 = arith.cmpi slt, %1, %39 : vector<1x128xi32>
    %41 = arith.andi %38, %40 : vector<1x128xi1>
    %c1_i32_12 = arith.constant 1 : i32
    %42 = vector.broadcast %c1_i32_12 : i32 to vector<1x128xi32>
    %43 = arith.addi %17, %42 : vector<1x128xi32>
    %c0_i32_13 = arith.constant 0 : i32
    %44 = vector.broadcast %c0_i32_13 : i32 to vector<1x128xi32>
    %45 = arith.cmpi sge, %43, %44 : vector<1x128xi32>
    %c1_i32_14 = arith.constant 1 : i32
    %46 = vector.broadcast %c1_i32_14 : i32 to vector<1x128xi32>
    %47 = arith.addi %17, %46 : vector<1x128xi32>
    %c60_i32_15 = arith.constant 60 : i32
    %48 = vector.broadcast %c60_i32_15 : i32 to vector<1x128xi32>
    %49 = arith.cmpi slt, %47, %48 : vector<1x128xi32>
    %50 = arith.andi %45, %49 : vector<1x128xi1>
    %c120_i32_16 = arith.constant 120 : i32
    %51 = vector.broadcast %c120_i32_16 : i32 to vector<1x128xi32>
    %52 = arith.cmpi slt, %1, %51 : vector<1x128xi32>
    %53 = arith.andi %50, %52 : vector<1x128xi1>
    %54 = vector.shape_cast %29 : vector<1x128xi1> to vector<1x128xi1>
    %55 = vector.broadcast %54 : vector<1x128xi1> to vector<8x128xi1>
    %56 = vector.shape_cast %41 : vector<1x128xi1> to vector<1x128xi1>
    %57 = vector.broadcast %56 : vector<1x128xi1> to vector<8x128xi1>
    %58 = vector.shape_cast %53 : vector<1x128xi1> to vector<1x128xi1>
    %59 = vector.broadcast %58 : vector<1x128xi1> to vector<8x128xi1>
    %60 = tpu.concatenate %55, %57, %59 in 0 : vector<8x128xi1>, vector<8x128xi1>, vector<8x128xi1> -> vector<24x128xi1>
    %61 = arith.extui %60 : vector<24x128xi1> to vector<24x128xi32>
    %62 = arith.sitofp %61 : vector<24x128xi32> to vector<24x128xf32>
    %63 = vector.shape_cast %29 : vector<1x128xi1> to vector<1x128xi1>
    %64 = vector.broadcast %63 : vector<1x128xi1> to vector<16x128xi1>
    %65 = vector.shape_cast %41 : vector<1x128xi1> to vector<1x128xi1>
    %66 = vector.broadcast %65 : vector<1x128xi1> to vector<16x128xi1>
    %67 = vector.shape_cast %53 : vector<1x128xi1> to vector<1x128xi1>
    %68 = vector.broadcast %67 : vector<1x128xi1> to vector<16x128xi1>
    %69 = tpu.concatenate %64, %66, %68 in 0 : vector<16x128xi1>, vector<16x128xi1>, vector<16x128xi1> -> vector<48x128xi1>
    %70 = arith.extui %69 : vector<48x128xi1> to vector<48x128xi32>
    %71 = arith.sitofp %70 : vector<48x128xi32> to vector<48x128xf32>
    %c0_17 = arith.constant 0 : index
    %c0_18 = arith.constant 0 : index
    %72 = vector.load %arg3[%c0_17, %c0_18] : memref<16x8xbf16, #tpu.memory_space<vmem>>, vector<16x8xbf16>
    %73 = arith.truncf %0 : vector<8x128xf32> to vector<8x128xbf16>
    %cst = arith.constant dense<0.000000e+00> : vector<16x128xf32>
    %74 = tpu.matmul %72, %73, %cst {dimension_numbers = #tpu.dot_dimension_numbers<[1], [0], [0], [1], [0, 0, 1, 1], [], []>} : vector<16x8xbf16>, vector<8x128xbf16>, vector<16x128xf32> -> vector<16x128xf32>
    %cst_19 = arith.constant dense<0.000000e+00> : vector<16xf32>
    %75 = vector.multi_reduction <add>, %74, %cst_19 [1] : vector<16x128xf32> to vector<16xf32>
    %76 = vector.shape_cast %75 : vector<16xf32> to vector<16x1xf32>
    %cst_20 = arith.constant 0.00833333377 : f32
    %77 = vector.broadcast %cst_20 : f32 to vector<16x1xf32>
    %78 = arith.mulf %76, %77 : vector<16x1xf32>
    %79 = vector.broadcast %78 : vector<16x1xf32> to vector<16x128xf32>
    %80 = arith.subf %74, %79 : vector<16x128xf32>
    %81 = arith.mulf %80, %80 : vector<16x128xf32>
    %cst_21 = arith.constant dense<0.000000e+00> : vector<16xf32>
    %82 = vector.multi_reduction <add>, %81, %cst_21 [1] : vector<16x128xf32> to vector<16xf32>
    %83 = vector.shape_cast %82 : vector<16xf32> to vector<16x1xf32>
    %cst_22 = arith.constant 8.000000e+00 : f32
    %84 = vector.broadcast %cst_22 : f32 to vector<16x1xf32>
    %85 = arith.mulf %84, %78 : vector<16x1xf32>
    %86 = arith.mulf %85, %78 : vector<16x1xf32>
    %87 = arith.subf %83, %86 : vector<16x1xf32>
    %cst_23 = arith.constant 0.00833333377 : f32
    %88 = vector.broadcast %cst_23 : f32 to vector<16x1xf32>
    %89 = arith.mulf %87, %88 : vector<16x1xf32>
    %cst_24 = arith.constant 0.000000e+00 : f32
    %90 = vector.broadcast %cst_24 : f32 to vector<16x1xf32>
    %91 = arith.maximumf %89, %90 : vector<16x1xf32>
    %cst_25 = arith.constant 9.99999974E-6 : f32
    %92 = vector.broadcast %cst_25 : f32 to vector<16x1xf32>
    %93 = arith.addf %91, %92 : vector<16x1xf32>
    %94 = math.rsqrt %93 : vector<16x1xf32>
    %95 = vector.broadcast %94 : vector<16x1xf32> to vector<16x128xf32>
    %96 = arith.mulf %80, %95 : vector<16x128xf32>
    %cst_26 = arith.constant 0.000000e+00 : f32
    %97 = vector.broadcast %cst_26 : f32 to vector<8x128xf32>
    %98 = arith.maximumf %0, %97 : vector<8x128xf32>
    %c1_i32_27 = arith.constant 1 : i32
    %99 = tpu.dynamic_rotate %98 by %c1_i32_27 dim 1 : vector<8x128xf32>, i32 -> vector<8x128xf32>
    %c127_i32 = arith.constant 127 : i32
    %100 = tpu.dynamic_rotate %98 by %c127_i32 dim 1 : vector<8x128xf32>, i32 -> vector<8x128xf32>
    %101 = tpu.concatenate %99, %98, %100 in 0 : vector<8x128xf32>, vector<8x128xf32>, vector<8x128xf32> -> vector<24x128xf32>
    %102 = arith.mulf %101, %62 : vector<24x128xf32>
    %c0_28 = arith.constant 0 : index
    %c0_29 = arith.constant 0 : index
    %103 = vector.load %arg1[%c0_28, %c0_29] : memref<16x24xbf16, #tpu.memory_space<vmem>>, vector<16x24xbf16>
    %104 = arith.truncf %102 : vector<24x128xf32> to vector<24x128xbf16>
    %cst_30 = arith.constant dense<0.000000e+00> : vector<16x128xf32>
    %105 = tpu.matmul %103, %104, %cst_30 {dimension_numbers = #tpu.dot_dimension_numbers<[1], [0], [0], [1], [0, 0, 1, 1], [], []>} : vector<16x24xbf16>, vector<24x128xbf16>, vector<16x128xf32> -> vector<16x128xf32>
    %cst_31 = arith.constant dense<0.000000e+00> : vector<16xf32>
    %106 = vector.multi_reduction <add>, %105, %cst_31 [1] : vector<16x128xf32> to vector<16xf32>
    %107 = vector.shape_cast %106 : vector<16xf32> to vector<16x1xf32>
    %cst_32 = arith.constant 0.00833333377 : f32
    %108 = vector.broadcast %cst_32 : f32 to vector<16x1xf32>
    %109 = arith.mulf %107, %108 : vector<16x1xf32>
    %110 = vector.broadcast %109 : vector<16x1xf32> to vector<16x128xf32>
    %111 = arith.subf %105, %110 : vector<16x128xf32>
    %112 = arith.mulf %111, %111 : vector<16x128xf32>
    %cst_33 = arith.constant dense<0.000000e+00> : vector<16xf32>
    %113 = vector.multi_reduction <add>, %112, %cst_33 [1] : vector<16x128xf32> to vector<16xf32>
    %114 = vector.shape_cast %113 : vector<16xf32> to vector<16x1xf32>
    %cst_34 = arith.constant 8.000000e+00 : f32
    %115 = vector.broadcast %cst_34 : f32 to vector<16x1xf32>
    %116 = arith.mulf %115, %109 : vector<16x1xf32>
    %117 = arith.mulf %116, %109 : vector<16x1xf32>
    %118 = arith.subf %114, %117 : vector<16x1xf32>
    %cst_35 = arith.constant 0.00833333377 : f32
    %119 = vector.broadcast %cst_35 : f32 to vector<16x1xf32>
    %120 = arith.mulf %118, %119 : vector<16x1xf32>
    %cst_36 = arith.constant 0.000000e+00 : f32
    %121 = vector.broadcast %cst_36 : f32 to vector<16x1xf32>
    %122 = arith.maximumf %120, %121 : vector<16x1xf32>
    %cst_37 = arith.constant 9.99999974E-6 : f32
    %123 = vector.broadcast %cst_37 : f32 to vector<16x1xf32>
    %124 = arith.addf %122, %123 : vector<16x1xf32>
    %125 = math.rsqrt %124 : vector<16x1xf32>
    %126 = vector.broadcast %125 : vector<16x1xf32> to vector<16x128xf32>
    %127 = arith.mulf %111, %126 : vector<16x128xf32>
    %cst_38 = arith.constant 0.000000e+00 : f32
    %128 = vector.broadcast %cst_38 : f32 to vector<16x128xf32>
    %129 = arith.maximumf %127, %128 : vector<16x128xf32>
    %c1_i32_39 = arith.constant 1 : i32
    %130 = tpu.dynamic_rotate %129 by %c1_i32_39 dim 1 : vector<16x128xf32>, i32 -> vector<16x128xf32>
    %c127_i32_40 = arith.constant 127 : i32
    %131 = tpu.dynamic_rotate %129 by %c127_i32_40 dim 1 : vector<16x128xf32>, i32 -> vector<16x128xf32>
    %132 = tpu.concatenate %130, %129, %131 in 0 : vector<16x128xf32>, vector<16x128xf32>, vector<16x128xf32> -> vector<48x128xf32>
    %133 = arith.mulf %132, %71 : vector<48x128xf32>
    %c0_41 = arith.constant 0 : index
    %c0_42 = arith.constant 0 : index
    %134 = vector.load %arg2[%c0_41, %c0_42] : memref<16x48xbf16, #tpu.memory_space<vmem>>, vector<16x48xbf16>
    %135 = arith.truncf %133 : vector<48x128xf32> to vector<48x128xbf16>
    %cst_43 = arith.constant dense<0.000000e+00> : vector<16x128xf32>
    %136 = tpu.matmul %134, %135, %cst_43 {dimension_numbers = #tpu.dot_dimension_numbers<[1], [0], [0], [1], [0, 0, 1, 1], [], []>} : vector<16x48xbf16>, vector<48x128xbf16>, vector<16x128xf32> -> vector<16x128xf32>
    %cst_44 = arith.constant dense<0.000000e+00> : vector<16xf32>
    %137 = vector.multi_reduction <add>, %136, %cst_44 [1] : vector<16x128xf32> to vector<16xf32>
    %138 = vector.shape_cast %137 : vector<16xf32> to vector<16x1xf32>
    %cst_45 = arith.constant 0.00833333377 : f32
    %139 = vector.broadcast %cst_45 : f32 to vector<16x1xf32>
    %140 = arith.mulf %138, %139 : vector<16x1xf32>
    %141 = vector.broadcast %140 : vector<16x1xf32> to vector<16x128xf32>
    %142 = arith.subf %136, %141 : vector<16x128xf32>
    %143 = arith.mulf %142, %142 : vector<16x128xf32>
    %cst_46 = arith.constant dense<0.000000e+00> : vector<16xf32>
    %144 = vector.multi_reduction <add>, %143, %cst_46 [1] : vector<16x128xf32> to vector<16xf32>
    %145 = vector.shape_cast %144 : vector<16xf32> to vector<16x1xf32>
    %cst_47 = arith.constant 8.000000e+00 : f32
    %146 = vector.broadcast %cst_47 : f32 to vector<16x1xf32>
    %147 = arith.mulf %146, %140 : vector<16x1xf32>
    %148 = arith.mulf %147, %140 : vector<16x1xf32>
    %149 = arith.subf %145, %148 : vector<16x1xf32>
    %cst_48 = arith.constant 0.00833333377 : f32
    %150 = vector.broadcast %cst_48 : f32 to vector<16x1xf32>
    %151 = arith.mulf %149, %150 : vector<16x1xf32>
    %cst_49 = arith.constant 0.000000e+00 : f32
    %152 = vector.broadcast %cst_49 : f32 to vector<16x1xf32>
    %153 = arith.maximumf %151, %152 : vector<16x1xf32>
    %cst_50 = arith.constant 9.99999974E-6 : f32
    %154 = vector.broadcast %cst_50 : f32 to vector<16x1xf32>
    %155 = arith.addf %153, %154 : vector<16x1xf32>
    %156 = math.rsqrt %155 : vector<16x1xf32>
    %157 = vector.broadcast %156 : vector<16x1xf32> to vector<16x128xf32>
    %158 = arith.mulf %142, %157 : vector<16x128xf32>
    %159 = arith.addf %158, %96 : vector<16x128xf32>
    %c0_51 = arith.constant 0 : index
    %c0_52 = arith.constant 0 : index
    %160 = vector.load %arg4[%c0_51, %c0_52] : memref<16x128xf32, #tpu.memory_space<vmem>>, vector<16x128xf32>
    tpu.vector_store %arg4[%c0_51, %c0_52], %159 {strides = array<i32>} : memref<16x128xf32, #tpu.memory_space<vmem>>, vector<16x128xf32>,
    return
  }
}

</mosaic_0001>

<bundles_post_ra>
// kernel: _lambda_.1
= control target key start
LH: loop header
LB: loop body
LE: loop exit
PB: predicated region body
PF: predicated region fallthrough
CT: control target
= control target key end

     0   :  { %v418_v1 = vmov 0.0   ;;  %vm515_vm0 = vcmask 1043456   ;;  %vm419_vm1 = vmmov 0   ;;  %s420_s17 = smov 127   ;;  %vm72_vm2 = vcmask 64512   ;;  %s421_s19 = smov 1   ;;  %s510_s0 = inlined_call_operand.vmem [shape: f32[8,128], index: 0, kind: input, shape index: {}]   ;;  %s511_s3 = inlined_call_operand.vmem [shape: bf16[16,8], index: 3, kind: input, shape index: {}]   ;;  %s512_s1 = inlined_call_operand.vmem [shape: bf16[16,24], index: 1, kind: input, shape index: {}]   ;;  %s513_s2 = inlined_call_operand.vmem [shape: bf16[16,48], index: 2, kind: input, shape index: {}]   ;;  %s514_s4 = inlined_call_operand.vmem [shape: f32[16,128], index: 4, kind: output, shape index: {}]  }
   0x1   :  { %v18_v0 = vld [vmem:[%s510_s0] sm:$0xff]  ;;  %373 = vmatprep.subr.bf16.mxu1 %v418_v1  ;;  %375 = vmatprep.mubr.msk.bf16.mxu1 %vm419_vm1, %v418_v1  ;;  %v19_v6 = vlaneseq }
   0x2   :  { %v151_v2 = vmax.f32 %v18_v0, 0.0  ;;  %v66_v3 = vpack.c.bf16 %v18_v0, %v18_v0  ;;  %387 = vmatprep.subr.bf16.mxu0 %v418_v1  ;;  %393 = vmatprep.mubr.msk.bf16.mxu0 %vm419_vm1, %v418_v1  ;;  %v403_v5 = vld [vmem:[%s511_s3] sm:$0xff]  }
   0x3   :  { %v20_v7 = vand.u32 127, %v19_v6  ;;  %v404_v28 = vld [vmem:[%s512_s1] sm:$0xff]  }
   0x4   :  { %154 = vrot.lane.b32.xlu0 %v151_v2, %s420_s17  ;;  %v78_v4 = vsel %vm515_vm0, %v66_v3, 0 }
   0x5   :  { %374 = vmatpush3.bf16.msra.mxu1 %v78_v4  ;;  %v465_v8 = vmul.u32.u64.low 2290649225, %v20_v7  ;;  %v466_v9 = vmul.u32.u64.high 2290649225, %v20_v7, %v465_v8  ;;  %vm41_vm10 = vcmp.lt.s32.totalorder %v20_v7, 120 }
   0x6   :  { %379 = vmatprep.subr.bf16.mxu1 %v418_v1 }
   0x7   :  { %v27_v10 = vshrl.u32 %v466_v9, 5 }
   0x8   :  { %152 = vrot.lane.b32.xlu0 %v151_v2, %s421_s19  ;;  %376 = vmatmul.mubr.msk.bf16.vlgmr.msra.gmra.mxu1 %vm72_vm2, %v403_v5 }
   0x9   :  { %383 = vmatprep.mubr.msk.bf16.mxu1 %vm419_vm1, %v418_v1  ;;  %v28_v11 = vmul.u32 60, %v27_v10 }
   0xb   :  { %v29_v12 = vsub.s32 %v20_v7, %v28_v11 }
   0xd   :  { %vm32_vm3 = vcmp.ne.s32.totalorder %v29_v12, 0  ;;  %vm33_vm4 = vcmp.lt.s32.totalorder %v29_v12, 0  ;;  %v35_v13 = vadd.s32 60, %v29_v12 }
   0xe   :  { %vm34_vm5 = vmand %vm33_vm4, %vm32_vm3  ;;  %vm516_vm3 = vcmask 1043456   ;;  %vm168_vm4 = vcmask 195584  }
   0xf   :  { %v36_v14 = vsel %vm34_vm5, %v35_v13, %v29_v12 }
  0x10   :  { %v47_v15 = vadd.s32 1, %v36_v14  ;;  %v37_v16 = vadd.s32 4294967295, %v36_v14  ;;  %vm43_vm8 = vcmp.ge.s32.totalorder %v36_v14, 0  ;;  %vm44_vm9 = vcmp.lt.s32.totalorder %v36_v14, 60 }
  0x11   :  { %vm45_vm14 = vmand %vm43_vm8, %vm44_vm9 }
  0x12   :  { %vm48_vm6 = vcmp.ge.s32.totalorder %v47_v15, 0  ;;  %vm49_vm7 = vcmp.lt.s32.totalorder %v47_v15, 60  ;;  %vm38_vm12 = vcmp.ge.s32.totalorder %v37_v16, 0  ;;  %vm39_vm13 = vcmp.lt.s32.totalorder %v37_v16, 60  ;;  %vm46_vm2 = vmand %vm45_vm14, %vm41_vm10  ;;  %v405_v15 = vld [vmem:[%s513_s2] sm:$0xff]  }
  0x13   :  { %vm50_vm11 = vmand %vm48_vm6, %vm49_vm7  ;;  %v356_v19 = vsel %vm46_vm2, 1.0, %v418_v1 }
  0x14   :  { %vm51_vm15 = vmand %vm50_vm11, %vm41_vm10  ;;  %v157_v23 = vmul.f32 %v356_v19, %v151_v2 }
  0x15   :  { %vm40_vm1 = vmand %vm38_vm12, %vm39_vm13  ;;  %v470_v17 = vsel %vm51_vm15, 1.0, %v418_v1 }
  0x16   :  { %vm42_vm0 = vmand %vm40_vm1, %vm41_vm10 }
  0x17   :  { %v475_v21 = vsel %vm42_vm0, 1.0, %v418_v1  ;;  %vm272_vm0 = vcmask 392192  }
  0x76   :  { %v155_v18 = vpop.permute.xlu0 %154 }
  0x77   :  { %v158_v20 = vmul.f32 %v470_v17, %v155_v18 }
  0x79   :  { %v162_v22 = vpack.c.bf16 %v158_v20, %v158_v20 }
  0x7a   :  { %v153_v24 = vpop.permute.xlu0 %152 }
  0x7b   :  { %v173_v25 = vsel %vm516_vm3, %v162_v22, 0  ;;  %v156_v26 = vmul.f32 %v475_v21, %v153_v24 }
  0x7c   :  { %380 = vmatpush3.bf16.msra.mxu1 %v173_v25 }
  0x7d   :  { %v161_v27 = vpack.c.bf16 %v157_v23, %v156_v26  ;;  %381 = vmatprep.subr.bf16.mxu1 %v418_v1 }
  0x80   :  { %382 = vmatpush3.bf16.msra.mxu1 %v161_v27 }
  0x83   :  { %384 = vmatmul.mubr.msk.bf16.vlgmr.msra.gmra.mxu1 %vm168_vm4, %v404_v28 }
  0xc8   :  { %v483_v29 = vpop.f32.mrf.mxu1 }
  0xca   :  { %v377_v30 = vpop.f32.mrf.mxu1 }
  0xcc   :  { %v485_v31 = vpop.f32.mrf.mxu1 }
  0xce   :  { %v378_v32 = vpop.f32.mrf.mxu1 }
 0x143   :  { %v209_v33 = vpop.f32.mrf.mxu1 }
 0x144   :  { %216 = vadd.xlane.f32.xlu1 %v209_v33 }
 0x145   :  { %v385_v34 = vpop.f32.mrf.mxu1 }
 0x147   :  { %v212_v35 = vpop.f32.mrf.mxu1 }
 0x148   :  { %218 = vadd.xlane.f32.xlu1 %v212_v35 }
 0x149   :  { %v386_v36 = vpop.f32.mrf.mxu1 }
 0x1cd   :  { %v217_v37 = vpop.xlane.xlu1 %216 }
 0x1ce   :  { %v220_v38 = vmul.f32 0.008333334, %v217_v37 }
 0x1d0   :  { %v222_v39 = vsub.f32 %v209_v33, %v220_v38  ;;  %v230_v45 = vmul.f32 8.0, %v220_v38 }
 0x1d1   :  { %v219_v40 = vpop.xlane.xlu1 %218 }
 0x1d2   :  { %v221_v41 = vmul.f32 0.008333334, %v219_v40  ;;  %v224_v42 = vmul.f32 %v222_v39, %v222_v39  ;;  %v232_v46 = vmul.f32 %v230_v45, %v220_v38 }
 0x1d4   :  { %226 = vadd.xlane.f32.xlu0 %v224_v42  ;;  %v223_v43 = vsub.f32 %v212_v35, %v221_v41  ;;  %v231_v47 = vmul.f32 8.0, %v221_v41 }
 0x1d6   :  { %v225_v44 = vmul.f32 %v223_v43, %v223_v43  ;;  %v233_v51 = vmul.f32 %v231_v47, %v221_v41 }
 0x1d8   :  { %121 = vadd.xlane.f32.xlu0 %v483_v29  ;;  %228 = vadd.xlane.f32.xlu1 %v225_v44 }
 0x25d   :  { %v227_v48 = vpop.xlane.xlu0 %226 }
 0x25e   :  { %v234_v49 = vsub.f32 %v227_v48, %v232_v46 }
 0x260   :  { %v236_v50 = vmul.f32 0.008333334, %v234_v49 }
 0x261   :  { %v229_v52 = vpop.xlane.xlu1 %228  ;;  %v122_v16 = vpop.xlane.xlu0 %121 }
 0x262   :  { %v238_v53 = vmax.f32 %v236_v50, 0.0  ;;  %v235_v54 = vsub.f32 %v229_v52, %v233_v51 }
 0x264   :  { %v240_v55 = vadd.f32 1e-05, %v238_v53  ;;  %v237_v56 = vmul.f32 0.008333334, %v235_v54 }
 0x266   :  { %406 = vrsqrt.f32 %v240_v55  ;;  %v239_v57 = vmax.f32 %v237_v56, 0.0 }
 0x268   :  { %v241_v58 = vadd.f32 1e-05, %v239_v57 }
 0x26a   :  { %408 = vrsqrt.f32 %v241_v58 }
 0x273   :  { %v407_v59 = vpop.eup %406 }
 0x274   :  { %v244_v60 = vmul.f32 %v407_v59, %v222_v39 }
 0x276   :  { %v246_v61 = vmax.f32 %v244_v60, 0.0 }
 0x277   :  { %v409_v62 = vpop.eup %408 }
 0x278   :  { %252 = vrot.lane.b32.xlu1 %v246_v61, %s420_s17  ;;  %v245_v63 = vmul.f32 %v409_v62, %v223_v43  ;;  %v258_v2 = vmul.f32 %v356_v19, %v246_v61 }
 0x27a   :  { %v247_v0 = vmax.f32 %v245_v63, 0.0 }
 0x27c   :  { %254 = vrot.lane.b32.xlu1 %v247_v0, %s420_s17  ;;  %v259_v3 = vmul.f32 %v356_v19, %v247_v0 }
 0x27e   :  { %v265_v4 = vpack.c.bf16 %v259_v3, %v258_v2 }
 0x280   :  { %248 = vrot.lane.b32.xlu1 %v246_v61, %s421_s19 }
 0x284   :  { %250 = vrot.lane.b32.xlu1 %v247_v0, %s421_s19 }
 0x2a8   :  { %123 = vadd.xlane.f32.xlu1 %v485_v31 }
 0x2ea   :  { %v253_v5 = vpop.permute.xlu1 %252 }
 0x2eb   :  { %v260_v7 = vmul.f32 %v470_v17, %v253_v5 }
 0x2ee   :  { %v255_v6 = vpop.permute.xlu1 %254 }
 0x2ef   :  { %v261_v8 = vmul.f32 %v470_v17, %v255_v6  ;;  %v125_v17 = vmul.f32 0.008333334, %v122_v16 }
 0x2f1   :  { %v266_v9 = vpack.c.bf16 %v261_v8, %v260_v7 }
 0x2f2   :  { %v249_v10 = vpop.permute.xlu1 %248 }
 0x2f3   :  { %388 = vmatpush3.bf16.msra.mxu0 %v266_v9  ;;  %v256_v12 = vmul.f32 %v475_v21, %v249_v10 }
 0x2f4   :  { %389 = vmatprep.subr.bf16.mxu0 %v418_v1 }
 0x2f6   :  { %v251_v11 = vpop.permute.xlu1 %250 }
 0x2f7   :  { %v257_v13 = vmul.f32 %v475_v21, %v251_v11  ;;  %390 = vmatpush3.bf16.msra.mxu0 %v265_v4  ;;  %v127_v21 = vsub.f32 %v483_v29, %v125_v17  ;;  %v135_v29 = vmul.f32 8.0, %v125_v17 }
 0x2f8   :  { %391 = vmatprep.subr.bf16.mxu0 %v418_v1 }
 0x2f9   :  { %v264_v14 = vpack.c.bf16 %v257_v13, %v256_v12  ;;  %v129_v24 = vmul.f32 %v127_v21, %v127_v21  ;;  %v137_v39 = vmul.f32 %v135_v29, %v125_v17 }
 0x2fb   :  { %392 = vmatpush3.bf16.msra.mxu0 %v264_v14 }
 0x2fe   :  { %394 = vmatmul.mubr.msk.bf16.vlgmr.msra.gmra.mxu0 %vm272_vm0, %v405_v15 }
 0x331   :  { %v124_v18 = vpop.xlane.xlu1 %123 }
 0x332   :  { %v126_v22 = vmul.f32 0.008333334, %v124_v18 }
 0x334   :  { %v128_v25 = vsub.f32 %v485_v31, %v126_v22  ;;  %v136_v38 = vmul.f32 8.0, %v126_v22 }
 0x336   :  { %v130_v26 = vmul.f32 %v128_v25, %v128_v25  ;;  %v138_v31 = vmul.f32 %v136_v38, %v126_v22 }
 0x3be   :  { %v310_v19 = vpop.f32.mrf.mxu0 }
 0x3bf   :  { %317 = vadd.xlane.f32.xlu0 %v310_v19 }
 0x3c0   :  { %v395_v20 = vpop.f32.mrf.mxu0 }
 0x3c2   :  { %v313_v23 = vpop.f32.mrf.mxu0 }
 0x3c3   :  { %319 = vadd.xlane.f32.xlu0 %v313_v23 }
 0x3c4   :  { %v396_v1 = vpop.f32.mrf.mxu0 }
 0x3c7   :  { %131 = vadd.xlane.f32.xlu0 %v129_v24 }
 0x3cb   :  { %133 = vadd.xlane.f32.xlu0 %v130_v26 }
 0x448   :  { %v318_v27 = vpop.xlane.xlu0 %317 }
 0x449   :  { %v321_v28 = vmul.f32 0.008333334, %v318_v27 }
 0x44b   :  { %v323_v30 = vsub.f32 %v310_v19, %v321_v28  ;;  %v331_v44 = vmul.f32 8.0, %v321_v28 }
 0x44c   :  { %v320_v32 = vpop.xlane.xlu0 %319 }
 0x44d   :  { %v322_v33 = vmul.f32 0.008333334, %v320_v32  ;;  %v325_v34 = vmul.f32 %v323_v30, %v323_v30  ;;  %v333_v47 = vmul.f32 %v331_v44, %v321_v28 }
 0x44f   :  { %327 = vadd.xlane.f32.xlu0 %v325_v34  ;;  %v324_v35 = vsub.f32 %v313_v23, %v322_v33  ;;  %v332_v48 = vmul.f32 8.0, %v322_v33 }
 0x450   :  { %v132_v37 = vpop.xlane.xlu0 %131 }
 0x451   :  { %v326_v36 = vmul.f32 %v324_v35, %v324_v35  ;;  %v139_v40 = vsub.f32 %v132_v37, %v137_v39  ;;  %v334_v54 = vmul.f32 %v332_v48, %v322_v33 }
 0x453   :  { %329 = vadd.xlane.f32.xlu0 %v326_v36  ;;  %v141_v42 = vmul.f32 0.008333334, %v139_v40 }
 0x454   :  { %v134_v41 = vpop.xlane.xlu0 %133 }
 0x455   :  { %v140_v43 = vsub.f32 %v134_v41, %v138_v31  ;;  %v143_v45 = vmax.f32 %v141_v42, 0.0 }
 0x457   :  { %v142_v46 = vmul.f32 0.008333334, %v140_v43  ;;  %v145_v51 = vadd.f32 1e-05, %v143_v45 }
 0x459   :  { %v144_v52 = vmax.f32 %v142_v46, 0.0  ;;  %410 = vrsqrt.f32 %v145_v51 }
 0x45b   :  { %v146_v58 = vadd.f32 1e-05, %v144_v52 }
 0x466   :  { %v411_v63 = vpop.eup %410 }
 0x467   :  { %v149_v2 = vmul.f32 %v411_v63, %v127_v21 }
 0x4d8   :  { %v328_v49 = vpop.xlane.xlu0 %327 }
 0x4d9   :  { %v335_v50 = vsub.f32 %v328_v49, %v333_v47 }
 0x4db   :  { %v337_v53 = vmul.f32 0.008333334, %v335_v50 }
 0x4dc   :  { %v330_v55 = vpop.xlane.xlu0 %329 }
 0x4dd   :  { %v339_v56 = vmax.f32 %v337_v53, 0.0  ;;  %v336_v57 = vsub.f32 %v330_v55, %v334_v54 }
 0x4df   :  { %v341_v59 = vadd.f32 1e-05, %v339_v56  ;;  %v338_v60 = vmul.f32 0.008333334, %v336_v57 }
 0x4e1   :  { %412 = vrsqrt.f32 %v341_v59  ;;  %v340_v61 = vmax.f32 %v338_v60, 0.0 }
 0x4e2   :  { %414 = vrsqrt.f32 %v146_v58 }
 0x4e3   :  { %v342_v62 = vadd.f32 1e-05, %v340_v61 }
 0x4e5   :  { %416 = vrsqrt.f32 %v342_v62 }
 0x4ee   :  { %v413_v0 = vpop.eup %412 }
 0x4ef   :  { %v345_v3 = vmul.f32 %v413_v0, %v323_v30  ;;  %v415_v4 = vpop.eup %414 }
 0x4f0   :  { %v150_v7 = vmul.f32 %v415_v4, %v128_v25 }
 0x4f1   :  { %v347_v5 = vadd.f32 %v345_v3, %v149_v2 }
 0x4f2   :  { %v417_v6 = vpop.eup %416 }
 0x4f3   :  { %349 = vst [vmem:[%s514_s4] sm:$0xff] %v347_v5  ;;  %v346_v8 = vmul.f32 %v417_v6, %v324_v35 }
 0x4f5   :  { %v348_v9 = vadd.f32 %v346_v8, %v150_v7 }
 0x4f7   :  { %350 = vst [vmem:[%s514_s4 + $0x8] sm:$0xff] %v348_v9 }

</bundles_post_ra>
